<compile_context>
chip_gen: v7x
topology: tpu7x:2x2x1
jax: 0.10.0
libtpu: 0.0.40
codegen_flags: <defaults>
</compile_context>

<pallas_src>
import jax
import jax.numpy as jnp
from jax.experimental import pallas as pl
from jax.experimental.pallas import tpu as pltpu

_LANES = 128
_MAX_BLOCK_ROWS = 8192                  # 8192 x 128 f32 = 4 MiB per buffer
_VMEM_BUDGET = 24 * 1024 * 1024         # budget for double-buffered input blocks
_VMEM_LIMIT = 32 * 1024 * 1024


def _make_kernel(block_rows, total_rows, with_mask):
    """Build an L1-loss reduction kernel specialized for this tiling."""
    needs_tail_mask = (total_rows % block_rows) != 0
    use_vreg_acc = (block_rows % 8) == 0     # False only for a tiny single block

    def kernel(*refs):
        if with_mask:
            pred_ref, target_ref, mask_ref, sum_ref, cnt_ref, acc_s, acc_c = refs
        else:
            pred_ref, target_ref, sum_ref, cnt_ref, acc_s, acc_c = refs

        j = pl.program_id(0)

        t = target_ref[...].astype(jnp.float32)
        p = pred_ref[...].astype(jnp.float32)
        valid = t > 0
        if with_mask:
            m = mask_ref[...]
            mvalid = m if m.dtype == jnp.bool_ else (m.astype(jnp.float32) > 0)
            valid = jnp.logical_and(valid, mvalid)
        if needs_tail_mask:
            # Last block overhangs the array: mask garbage rows by global index.
            row = jax.lax.broadcasted_iota(jnp.int32, (block_rows, _LANES), 0)
            valid = jnp.logical_and(valid, j * block_rows + row < total_rows)

        absdiff = jnp.abs(jnp.where(valid, t - p, jnp.float32(0.0)))
        validf = valid.astype(jnp.float32)

        if use_vreg_acc:
            @pl.when(j == 0)
            def _():
                acc_s[...] = jnp.zeros_like(acc_s)
                acc_c[...] = jnp.zeros_like(acc_c)

            # Sublane-aligned partial reduce: (R,128) -> (R/8,8,128) -> (8,128).
            acc_s[...] += absdiff.reshape(block_rows // 8, 8, _LANES).sum(axis=0)
            acc_c[...] += validf.reshape(block_rows // 8, 8, _LANES).sum(axis=0)

            @pl.when(j == pl.num_programs(0) - 1)
            def _():
                sum_ref[0, 0] = jnp.sum(acc_s[...])
                cnt_ref[0, 0] = jnp.sum(acc_c[...])
        else:
            # Single sub-vreg block (grid == 1): reduce straight to SMEM scalars.
            sum_ref[0, 0] = jnp.sum(absdiff)
            cnt_ref[0, 0] = jnp.sum(validf)

    return kernel


def _plan(total_rows, itemsizes):
    """Pick (block_rows, grid) from a double-buffered VMEM budget."""
    bytes_per_row = 2 * _LANES * sum(itemsizes)      # x2: pipeline double buffer
    by_budget = (_VMEM_BUDGET // bytes_per_row) // 32 * 32
    max_rows = max(32, min(_MAX_BLOCK_ROWS, by_budget))
    if total_rows <= max_rows:
        return total_rows, 1            # one full-extent block, no tail mask
    return max_rows, -(-total_rows // max_rows)


def l1_loss(pred, target, mask=None):
    assert pred.ndim == target.ndim, "inconsistent dimensions"
    assert pred.shape == target.shape, "pred/target shape mismatch"
    if mask is not None:
        assert mask.shape == target.shape, "mask shape mismatch"

    n = int(target.size)
    total_rows = -(-n // _LANES)

    def _prep(x):
        flat = x.reshape(-1)                         # free metadata-only reshape
        if n % _LANES != 0:
            # TODO(synk): rare path (numel not a multiple of 128) materializes
            # one zero-padded copy; zero target/mask padding is never "valid",
            # so semantics are unchanged.
            flat = jnp.pad(flat, (0, total_rows * _LANES - n))
        return flat.reshape(total_rows, _LANES)

    inputs = [pred, target] if mask is None else [pred, target, mask]
    itemsizes = [jnp.dtype(x.dtype).itemsize for x in inputs]
    block_rows, grid = _plan(total_rows, itemsizes)

    kernel = _make_kernel(block_rows, total_rows, with_mask=mask is not None)

    in_spec = pl.BlockSpec((block_rows, _LANES), lambda j: (j, 0))
    out_specs = (
        pl.BlockSpec((1, 1), lambda j: (0, 0), memory_space=pltpu.SMEM),
        pl.BlockSpec((1, 1), lambda j: (0, 0), memory_space=pltpu.SMEM),
    )
    out_shape = (jax.ShapeDtypeStruct((1, 1), jnp.float32),
                 jax.ShapeDtypeStruct((1, 1), jnp.float32))
    scratch = [pltpu.VMEM((8, _LANES), jnp.float32),
               pltpu.VMEM((8, _LANES), jnp.float32)]

    sum_out, cnt_out = pl.pallas_call(
        kernel,
        out_shape=out_shape,
        grid_spec=pltpu.PrefetchScalarGridSpec(
            num_scalar_prefetch=0,
            grid=(grid,),
            in_specs=[in_spec] * len(inputs),
            out_specs=out_specs,
            scratch_shapes=scratch),
        compiler_params=pltpu.CompilerParams(
            dimension_semantics=("arbitrary",),
            vmem_limit_bytes=_VMEM_LIMIT),
    )(*[_prep(x) for x in inputs])

    # 0/0 -> NaN matches torch mean() over an empty selection.
    return sum_out[0, 0] / cnt_out[0, 0]


def _l1_loss_ref(pred, target, mask=None):
    valid = target > 0
    if mask is not None:
        valid = valid & (mask.astype(jnp.float32) > 0)
    validf = valid.astype(jnp.float32)
    d = jnp.abs(target.astype(jnp.float32) - pred.astype(jnp.float32)) * validf
    return jnp.sum(d) / jnp.sum(validf)


if __name__ == "__main__":
    key = jax.random.PRNGKey(0)
    kp, kt, km = jax.random.split(key, 3)

    # Small NCHW case (single full-extent block).
    pred = jax.random.normal(kp, (2, 4, 16, 16), dtype=jnp.float32)
    target = jax.random.normal(kt, (2, 4, 16, 16), dtype=jnp.float32)
    mask = (jax.random.uniform(km, (2, 4, 16, 16)) > 0.3).astype(jnp.float32)

    loss = l1_loss(pred, target)
    jax.block_until_ready(loss)
    ref = _l1_loss_ref(pred, target)
    assert jnp.allclose(loss, ref, rtol=1e-5, atol=1e-6), (loss, ref)

    loss_m = l1_loss(pred, target, mask)
    jax.block_until_ready(loss_m)
    ref_m = _l1_loss_ref(pred, target, mask)
    assert jnp.allclose(loss_m, ref_m, rtol=1e-5, atol=1e-6), (loss_m, ref_m)

    # Non-128-multiple numel: exercises the padded fallback + sub-vreg block.
    kp1, kt1 = jax.random.split(jax.random.PRNGKey(2))
    pred_s = jax.random.normal(kp1, (2, 3, 5, 7), dtype=jnp.float32)
    target_s = jax.random.normal(kt1, (2, 3, 5, 7), dtype=jnp.float32)
    loss_s = l1_loss(pred_s, target_s)
    jax.block_until_ready(loss_s)
    ref_s = _l1_loss_ref(pred_s, target_s)
    assert jnp.allclose(loss_s, ref_s, rtol=1e-5, atol=1e-6), (loss_s, ref_s)

    # Larger case: multi-block grid, partial (row-masked) tail block, narrow
    # int8 mask streamed without any wrapper-side cast.
    kp2, kt2, km2 = jax.random.split(jax.random.PRNGKey(1), 3)
    pred_l = jax.random.normal(kp2, (3, 4, 360, 360), dtype=jnp.float32)
    target_l = jax.random.normal(kt2, (3, 4, 360, 360), dtype=jnp.float32)
    mask_l = (jax.random.uniform(km2, (3, 4, 360, 360)) > 0.5).astype(jnp.int8)

    loss_l = l1_loss(pred_l, target_l, mask_l)
    jax.block_until_ready(loss_l)
    ref_l = _l1_loss_ref(pred_l, target_l, mask_l)
    assert jnp.allclose(loss_l, ref_l, rtol=1e-4, atol=1e-6), (loss_l, ref_l)

    print("KERNEL_OK")
</pallas_src>

<mosaic_0001>
module attributes {stable_mosaic.version = 11 : i64} {
  func.func @kernel(%arg0: i32, %arg1: memref<16x128xf32, #tpu.memory_space<vmem>>, %arg2: memref<16x128xf32, #tpu.memory_space<vmem>>, %arg3: memref<1x1xf32, #tpu.memory_space<smem>>, %arg4: memref<1x1xf32, #tpu.memory_space<smem>>, %arg5: memref<8x128xf32, #tpu.memory_space<vmem>>, %arg6: memref<8x128xf32, #tpu.memory_space<vmem>>) attributes {dimension_semantics = [#tpu.dimension_semantics<arbitrary>], iteration_bounds = array<i64: 1>, scalar_prefetch = 0 : i64, scratch_operands = 2 : i64, tpu.core_type = #tpu.core_type<tc>, window_params = [{transform_indices = @transform_0, window_bounds = array<i64: 16, 128>}, {transform_indices = @transform_1, window_bounds = array<i64: 16, 128>}, {transform_indices = @transform_2, window_bounds = array<i64: 1, 1>}, {transform_indices = @transform_3, window_bounds = array<i64: 1, 1>}]} {
    %c0 = arith.constant 0 : index
    %c0_0 = arith.constant 0 : index
    %0 = vector.load %arg2[%c0, %c0_0] : memref<16x128xf32, #tpu.memory_space<vmem>>, vector<16x128xf32>
    %c0_1 = arith.constant 0 : index
    %c0_2 = arith.constant 0 : index
    %1 = vector.load %arg1[%c0_1, %c0_2] : memref<16x128xf32, #tpu.memory_space<vmem>>, vector<16x128xf32>
    %cst = arith.constant 0.000000e+00 : f32
    %2 = vector.broadcast %cst : f32 to vector<16x128xf32>
    %3 = arith.cmpf ogt, %0, %2 : vector<16x128xf32>
    %4 = arith.subf %0, %1 : vector<16x128xf32>
    %cst_3 = arith.constant 0.000000e+00 : f32
    %5 = vector.broadcast %cst_3 : f32 to vector<16x128xf32>
    %6 = arith.select %3, %4, %5 : vector<16x128xi1>, vector<16x128xf32>
    %7 = math.absf %6 : vector<16x128xf32>
    %8 = arith.extui %3 : vector<16x128xi1> to vector<16x128xi32>
    %9 = arith.sitofp %8 : vector<16x128xi32> to vector<16x128xf32>
    %c0_i32 = arith.constant 0 : i32
    %10 = arith.cmpi eq, %arg0, %c0_i32 : i32
    %11 = arith.extui %10 : i1 to i32
    %c0_i32_4 = arith.constant 0 : i32
    %12 = arith.cmpi ne, %11, %c0_i32_4 : i32
    scf.if %12 {
      %cst_17 = arith.constant 0.000000e+00 : f32
      %26 = vector.broadcast %cst_17 : f32 to vector<8x128xf32>
      %c0_18 = arith.constant 0 : index
      %c0_19 = arith.constant 0 : index
      %27 = vector.load %arg5[%c0_18, %c0_19] : memref<8x128xf32, #tpu.memory_space<vmem>>, vector<8x128xf32>
      tpu.vector_store %arg5[%c0_18, %c0_19], %26 {strides = array<i32>} : memref<8x128xf32, #tpu.memory_space<vmem>>, vector<8x128xf32>,
      %cst_20 = arith.constant 0.000000e+00 : f32
      %28 = vector.broadcast %cst_20 : f32 to vector<8x128xf32>
      %c0_21 = arith.constant 0 : index
      %c0_22 = arith.constant 0 : index
      %29 = vector.load %arg6[%c0_21, %c0_22] : memref<8x128xf32, #tpu.memory_space<vmem>>, vector<8x128xf32>
      tpu.vector_store %arg6[%c0_21, %c0_22], %28 {strides = array<i32>} : memref<8x128xf32, #tpu.memory_space<vmem>>, vector<8x128xf32>,
    } else {
    }
    %c0_5 = arith.constant 0 : index
    %c0_6 = arith.constant 0 : index
    %13 = vector.load %arg5[%c0_5, %c0_6] : memref<8x128xf32, #tpu.memory_space<vmem>>, vector<8x128xf32>
    %14 = vector.shape_cast %7 : vector<16x128xf32> to vector<2x8x128xf32>
    %cst_7 = arith.constant dense<0.000000e+00> : vector<8x128xf32>
    %15 = vector.multi_reduction <add>, %14, %cst_7 [0] : vector<2x8x128xf32> to vector<8x128xf32>
    %16 = arith.addf %13, %15 : vector<8x128xf32>
    %c0_8 = arith.constant 0 : index
    %c0_9 = arith.constant 0 : index
    %17 = vector.load %arg5[%c0_8, %c0_9] : memref<8x128xf32, #tpu.memory_space<vmem>>, vector<8x128xf32>
    tpu.vector_store %arg5[%c0_8, %c0_9], %16 {strides = array<i32>} : memref<8x128xf32, #tpu.memory_space<vmem>>, vector<8x128xf32>,
    %c0_10 = arith.constant 0 : index
    %c0_11 = arith.constant 0 : index
    %18 = vector.load %arg6[%c0_10, %c0_11] : memref<8x128xf32, #tpu.memory_space<vmem>>, vector<8x128xf32>
    %19 = vector.shape_cast %9 : vector<16x128xf32> to vector<2x8x128xf32>
    %cst_12 = arith.constant dense<0.000000e+00> : vector<8x128xf32>
    %20 = vector.multi_reduction <add>, %19, %cst_12 [0] : vector<2x8x128xf32> to vector<8x128xf32>
    %21 = arith.addf %18, %20 : vector<8x128xf32>
    %c0_13 = arith.constant 0 : index
    %c0_14 = arith.constant 0 : index
    %22 = vector.load %arg6[%c0_13, %c0_14] : memref<8x128xf32, #tpu.memory_space<vmem>>, vector<8x128xf32>
    tpu.vector_store %arg6[%c0_13, %c0_14], %21 {strides = array<i32>} : memref<8x128xf32, #tpu.memory_space<vmem>>, vector<8x128xf32>,
    %c0_i32_15 = arith.constant 0 : i32
    %23 = arith.cmpi eq, %arg0, %c0_i32_15 : i32
    %24 = arith.extui %23 : i1 to i32
    %c0_i32_16 = arith.constant 0 : i32
    %25 = arith.cmpi ne, %24, %c0_i32_16 : i32
    scf.if %25 {
      %c0_17 = arith.constant 0 : index
      %c0_18 = arith.constant 0 : index
      %26 = vector.load %arg5[%c0_17, %c0_18] : memref<8x128xf32, #tpu.memory_space<vmem>>, vector<8x128xf32>
      %27 = vector.shape_cast %26 : vector<8x128xf32> to vector<1x8x128xf32>
      %cst_19 = arith.constant dense<0.000000e+00> : vector<1xf32>
      %28 = vector.multi_reduction <add>, %27, %cst_19 [1, 2] : vector<1x8x128xf32> to vector<1xf32>
      %29 = vector.shape_cast %28 : vector<1xf32> to vector<1x1x1xf32>
      %30 = vector.extract %29[0, 0, 0] : f32 from vector<1x1x1xf32>
      %c0_20 = arith.constant 0 : index
      %c0_21 = arith.constant 0 : index
      %31 = memref.load %arg3[%c0_20, %c0_21] : memref<1x1xf32, #tpu.memory_space<smem>>
      memref.store %30, %arg3[%c0_20, %c0_21] : memref<1x1xf32, #tpu.memory_space<smem>>
      %c0_22 = arith.constant 0 : index
      %c0_23 = arith.constant 0 : index
      %32 = vector.load %arg6[%c0_22, %c0_23] : memref<8x128xf32, #tpu.memory_space<vmem>>, vector<8x128xf32>
      %33 = vector.shape_cast %32 : vector<8x128xf32> to vector<1x8x128xf32>
      %cst_24 = arith.constant dense<0.000000e+00> : vector<1xf32>
      %34 = vector.multi_reduction <add>, %33, %cst_24 [1, 2] : vector<1x8x128xf32> to vector<1xf32>
      %35 = vector.shape_cast %34 : vector<1xf32> to vector<1x1x1xf32>
      %36 = vector.extract %35[0, 0, 0] : f32 from vector<1x1x1xf32>
      %c0_25 = arith.constant 0 : index
      %c0_26 = arith.constant 0 : index
      %37 = memref.load %arg4[%c0_25, %c0_26] : memref<1x1xf32, #tpu.memory_space<smem>>
      memref.store %36, %arg4[%c0_25, %c0_26] : memref<1x1xf32, #tpu.memory_space<smem>>
    } else {
    }
    return
  }
  func.func @transform_0(%arg0: i32) -> (i32, i32) {
    %c0_i32 = arith.constant 0 : i32
    %c0_i32_0 = arith.constant 0 : i32
    return %arg0, %c0_i32 : i32, i32
  }
  func.func @transform_1(%arg0: i32) -> (i32, i32) {
    %c0_i32 = arith.constant 0 : i32
    %c0_i32_0 = arith.constant 0 : i32
    return %arg0, %c0_i32 : i32, i32
  }
  func.func @transform_2(%arg0: i32) -> (i32, i32) {
    %c0_i32 = arith.constant 0 : i32
    %c0_i32_0 = arith.constant 0 : i32
    %c0_i32_1 = arith.constant 0 : i32
    return %c0_i32, %c0_i32_0 : i32, i32
  }
  func.func @transform_3(%arg0: i32) -> (i32, i32) {
    %c0_i32 = arith.constant 0 : i32
    %c0_i32_0 = arith.constant 0 : i32
    %c0_i32_1 = arith.constant 0 : i32
    return %c0_i32, %c0_i32_0 : i32, i32
  }
}

</mosaic_0001>

<bundles_post_ra>
// kernel: tpu_custom_call.1
= control target key start
LH: loop header
LB: loop body
LE: loop exit
PB: predicated region body
PF: predicated region fallthrough
CT: control target
= control target key end

     0   :  { %9 = vsyncpa [#allocation5], 0  ;;  %s287_s0 = inlined_call_operand.hbm [shape: f32[16,128], index: 0, kind: input, shape index: {}]   ;;  %s288_s1 = inlined_call_operand.hbm [shape: f32[16,128], index: 1, kind: input, shape index: {}]   ;;  %s289_s2 = inlined_call_operand.hbm [shape: f32[1,1], index: 2, kind: output, shape index: {0}]   ;;  %s290_s3 = inlined_call_operand.hbm [shape: f32[1,1], index: 3, kind: output, shape index: {1}]  }
   0x1   :  { %10 = vsyncpa [#allocation8], 0 }
   0x2   :  { %11 = vsyncpa [#allocation6], 0 }
   0x3   :  { %12 = vsyncpa [#allocation11], 0  ;;  %s212_s12 = smov [#allocation4]   ;;  %s140_s16 = scalar_lea.hbm %s287_s0, 256 }
   0x4   :  { %s18_s13 = sshll.u32 %s212_s12, 4  ;;  %p141_p0 = scmp.ne.s32.totalorder %s287_s0, %s140_s16  ;;  %s19_s13 = int_to_ptr.vmem [resolvable:$true] %s18_s13 }
   0x5   :  { %p144_p1 = scmp.lt.u32.totalorder %s140_s16, %s287_s0 }
   0x7   :  { %p146_p2 = pnand %p144_p1, %p141_p0 }
   0x9   :  { %149 = shalt.err (!%p146_p2)
}
   0xa   :  { %s150_s21 = scalar_lea.vmem %s19_s13, 256  ;;  %p155_p4 = scmp.lt.s32.totalorder %s19_s13, %s19_s13 }
   0xb   :  { %p151_p3 = scmp.ne.s32.totalorder %s19_s13, %s150_s21  ;;  %p156_p5 = scmp.lt.s32.totalorder %s150_s21, %s150_s21 }
   0xd   :  { %p157_p6 = por %p156_p5, %p155_p4 }
   0xf   :  { %p158_p7 = pnand %p157_p6, %p151_p3 }
  0x11   :  { %161 = shalt.err (!%p158_p7)
}
  0x12   :  { %s213_s22 = smov 128   ;;  %s214_s23 = smov 8  }
  0x13   :  { %24 = dma.hbm_to_vmem [thread:$0]  %s287_s0, 256, %s19_s13, [#allocation5], %s213_s22, %s213_s22, %s214_s23  }
  0x14   :  { %s215_s26 = smov [#allocation7]   ;;  %s162_s30 = scalar_lea.hbm %s288_s1, 256 }
  0x15   :  { %s30_s27 = sshll.u32 %s215_s26, 4  ;;  %p163_p8 = scmp.ne.s32.totalorder %s288_s1, %s162_s30  ;;  %s31_s27 = int_to_ptr.vmem [resolvable:$true] %s30_s27 }
  0x16   :  { %p166_p9 = scmp.lt.u32.totalorder %s162_s30, %s288_s1 }
  0x18   :  { %p168_p10 = pnand %p166_p9, %p163_p8 }
  0x1a   :  { %171 = shalt.err (!%p168_p10)
}
  0x1b   :  { %s172_s8 = scalar_lea.vmem %s31_s27, 256  ;;  %p177_p12 = scmp.lt.s32.totalorder %s31_s27, %s31_s27 }
  0x1c   :  { %p173_p11 = scmp.ne.s32.totalorder %s31_s27, %s172_s8  ;;  %p178_p13 = scmp.lt.s32.totalorder %s172_s8, %s172_s8 }
  0x1e   :  { %p179_p0 = por %p178_p13, %p177_p12 }
  0x20   :  { %p180_p1 = pnand %p179_p0, %p173_p11 }
  0x22   :  { %183 = shalt.err (!%p180_p1)
}
  0x23   :  { %36 = dma.hbm_to_vmem [thread:$0]  %s288_s1, 256, %s31_s27, [#allocation8], %s213_s22, %s213_s22, %s214_s23  }
  0x24   :  { %204 = dma.done.wait [#allocation5], 256  }
  0x25   :  { %205 = vsyncadd [#allocation5], 4294967040 }
  0x26   :  { %206 = dma.done.wait [#allocation8], 256  }
  0x27   :  { %207 = vsyncadd [#allocation8], 4294967040  ;;  %v43_v0 = vld [vmem:[#allocation7] sm:$0xff]  ;;  %v44_v1 = vld [vmem:[#allocation7 + $0x8] sm:$0xff]  ;;  %v216_v10 = vmov 0.0   ;;  %s184_s12 = scalar_lea.hbm %s289_s2, 16 }
  0x28   :  { %v45_v2 = vld [vmem:[#allocation4] sm:$0xff]  ;;  %v46_v3 = vld [vmem:[#allocation4 + $0x8] sm:$0xff]  ;;  %vm47_vm0 = vcmp.gt.f32.partialorder %v43_v0, 0.0  ;;  %vm48_vm1 = vcmp.gt.f32.partialorder %v44_v1, 0.0  ;;  %p185_p2 = scmp.ne.s32.totalorder %s289_s2, %s184_s12  ;;  %p188_p3 = scmp.lt.u32.totalorder %s184_s12, %s289_s2 }
  0x29   :  { %v49_v4 = vsub.f32 %v43_v0, %v45_v2  ;;  %v50_v5 = vsub.f32 %v44_v1, %v46_v3  ;;  %v127_v11 = vsel %vm47_vm0, 1.0, %v216_v10  ;;  %v128_v12 = vsel %vm48_vm1, 1.0, %v216_v10 }
  0x2a   :  { %v70_v14 = vadd.f32 %v128_v12, %v127_v11  ;;  %p190_p4 = pnand %p188_p3, %p185_p2 }
  0x2b   :  { %v51_v6 = vsel %vm47_vm0, %v49_v4, 0.0  ;;  %v52_v7 = vsel %vm48_vm1, %v50_v5, 0.0 }
  0x2c   :  { %v53_v8 = vand.u32 2147483647, %v51_v6  ;;  %v54_v9 = vand.u32 2147483647, %v52_v7 }
  0x2e   :  { %v66_v13 = vadd.f32 %v54_v9, %v53_v8 }
  0x30   :  { %77 = vadd.xlane.f32.xlu0 %v66_v13 }
  0x34   :  { %89 = vadd.xlane.f32.xlu0 %v70_v14 }
  0xbd   :  { %v78_v15 = vpop.xlane.xlu0 %77 }
  0xbe   :  { %v79_v16 = vrot.slane %v78_v15, 4 }
  0xc0   :  { %v80_v17 = vadd.f32 %v79_v16, %v78_v15 }
  0xc1   :  { %v90_v18 = vpop.xlane.xlu0 %89 }
  0xc2   :  { %v81_v19 = vrot.slane %v80_v17, 2  ;;  %v91_v20 = vrot.slane %v90_v18, 4 }
  0xc4   :  { %v92_v21 = vadd.f32 %v91_v20, %v90_v18  ;;  %v82_v22 = vadd.f32 %v81_v19, %v80_v17 }
  0xc6   :  { %v93_v23 = vrot.slane %v92_v21, 2  ;;  %v83_v24 = vrot.slane %v82_v22, 1 }
  0xc8   :  { %v94_v25 = vadd.f32 %v93_v23, %v92_v21  ;;  %v84_v26 = vadd.f32 %v83_v24, %v82_v22 }
  0xca   :  { %129 = vpush %v84_v26  ;;  %v95_v27 = vrot.slane %v94_v25, 1 }
  0xcc   :  { %v96_v28 = vadd.f32 %v95_v27, %v94_v25 }
  0xce   :  { %131 = vpush %v96_v28 }
  0xfb   :  { %s130_s1 = spop %129 }
  0xfc   :  { %87 = sst [smem:[#allocation9]] %s130_s1 }
  0xfd   :  { %193 = shalt.err (!%p190_p4)
}
  0xfe   :  { %s217_s17 = smov [#allocation9]   ;;  %s194_s23 = scalar_lea.hbm %s290_s3, 16 }
  0xff   :  { %107 = dma.smem_to_hbm %s217_s17, 16, %s289_s2, [#allocation6]  }
 0x100   :  { %s132_s20 = spop %131  ;;  %p195_p5 = scmp.ne.s32.totalorder %s290_s3, %s194_s23 }
 0x101   :  { %99 = sst [smem:[#allocation10]] %s132_s20  ;;  %p198_p6 = scmp.lt.u32.totalorder %s194_s23, %s290_s3 }
 0x103   :  { %p200_p7 = pnand %p198_p6, %p195_p5 }
 0x105   :  { %203 = shalt.err (!%p200_p7)
}
 0x106   :  { %s218_s28 = smov [#allocation10]  }
 0x107   :  { %115 = dma.smem_to_hbm %s218_s28, 16, %s290_s3, [#allocation11]  }
 0x108   :  { %208 = dma.done.wait [#allocation6], 16  }
 0x109   :  { %209 = vsyncadd [#allocation6], 4294967280 }
 0x10a   :  { %210 = dma.done.wait [#allocation11], 16  }
 0x10b   :  { %211 = vsyncadd [#allocation11], 4294967280 }
 0x10c   :  { %122 = sfence }
 0x10d   :  { %123 = vsyncpa [#allocation5], 1 }
 0x10e   :  { %124 = vsyncpa [#allocation8], 1 }
 0x10f   :  { %125 = vsyncpa [#allocation6], 1 }
 0x110   :  { %126 = vsyncpa [#allocation11], 1 }

</bundles_post_ra>
